<compile_context>
chip_gen: v7x
topology: tpu7x:2x2x1
jax: 0.10.0
libtpu: 0.0.40
codegen_flags: <defaults>
</compile_context>

<pallas_src>
import functools
import math

import jax
import jax.numpy as jnp
import numpy as np
from jax.experimental import pallas as pl
from jax.experimental.pallas import tpu as pltpu
from jax.scipy.special import erf as jsp_erf

LN_EPS = 1e-12


# ----------------------------- in-kernel helpers -----------------------------

def _erf_approx(x):
    # Numerical-Recipes erfc rational approximation (|err| <= 1.2e-7, ~fp32 precision).
    # TODO(synk): lax.erf has no guaranteed Mosaic lowering; using an fp32-accurate
    # rational approximation inside the kernel instead of the exact erf primitive.
    a = jnp.abs(x)
    t = 1.0 / (1.0 + 0.5 * a)
    poly = -1.26551223 + t * (1.00002368 + t * (0.37409196 + t * (0.09678418 +
           t * (-0.18628806 + t * (0.27886807 + t * (-1.13520398 + t * (1.48851587 +
           t * (-0.82215223 + t * 0.17087277))))))))
    erfc = t * jnp.exp(-a * a + poly)
    return jnp.where(x >= 0.0, 1.0 - erfc, erfc - 1.0)


def _layernorm(x, gamma, beta):
    u = jnp.mean(x, axis=-1, keepdims=True)
    s = jnp.mean((x - u) ** 2, axis=-1, keepdims=True)
    return gamma * ((x - u) * jax.lax.rsqrt(s + LN_EPS)) + beta


# --------------------------------- kernels -----------------------------------

def ln_kernel(x_ref, g_ref, b_ref, o_ref):
    # x_ref block: (1, S, H); gamma/beta: (1, H)   -- all fp32
    o_ref[0] = _layernorm(x_ref[0], g_ref[...], b_ref[...])


def bert_layer_kernel(xq_ref, xf_ref, mask_ref,
                      qw_ref, qb_ref, kw_ref, kb_ref, vw_ref, vb_ref,
                      aow_ref, aob_ref, g1_ref, b1_ref,
                      iw_ref, ib_ref, ow_ref, ob_ref, g2_ref, b2_ref,
                      o_ref, k_scr, v_scr, *, num_heads, head_dim):
    f32 = jnp.float32
    bf16 = jnp.bfloat16
    scale = 1.0 / math.sqrt(head_dim)

    # ---- K / V for the full sequence: computed once per batch element (q-tile 0)
    #      and kept resident in VMEM scratch for the remaining q-tiles. ----
    @pl.when(pl.program_id(1) == 0)
    def _():
        xf_b = xf_ref[0].astype(bf16)                                   # (S, H)
        k = jnp.dot(xf_b, kw_ref[...], preferred_element_type=f32) + kb_ref[...]
        v = jnp.dot(xf_b, vw_ref[...], preferred_element_type=f32) + vb_ref[...]
        s_len = k.shape[0]
        k_scr[...] = k.reshape(s_len, num_heads, head_dim).transpose(1, 0, 2).astype(bf16)
        v_scr[...] = v.reshape(s_len, num_heads, head_dim).transpose(1, 0, 2).astype(bf16)

    xq = xq_ref[0]            # (TQ, H) fp32 query / residual rows for this grid step
    m = mask_ref[...]         # (1, 1, S) additive attention mask (broadcasts heads & rows)
    xq_b = xq.astype(bf16)

    # Q projection: bf16 MXU inputs, fp32 accumulation; q pre-scaled once.
    q = (jnp.dot(xq_b, qw_ref[...], preferred_element_type=f32) + qb_ref[...]) * scale
    tq = q.shape[0]
    q4 = q.reshape(tq, num_heads, head_dim).transpose(1, 0, 2).astype(bf16)   # (h, TQ, d)

    # Batched per-head attention: one dot_general with a leading batch dim (no per-head
    # XLU transposes, no concatenate).  Scores / softmax stats kept in fp32.
    s = jnp.einsum('hqd,hkd->hqk', q4, k_scr[...], preferred_element_type=f32) + m
    s = s - jnp.max(s, axis=-1, keepdims=True)           # stable softmax (== nn.Softmax)
    p = jnp.exp(s)
    p = p * pl.reciprocal(jnp.sum(p, axis=-1, keepdims=True), approx=True)
    ctx = jnp.einsum('hqk,hkd->hqd', p.astype(bf16), v_scr[...],
                     preferred_element_type=f32)
    ctx = ctx.transpose(1, 0, 2).reshape(tq, num_heads * head_dim)            # (TQ, H)

    attn = jnp.dot(ctx.astype(bf16), aow_ref[...], preferred_element_type=f32) + aob_ref[...]
    attn = _layernorm(attn + xq, g1_ref[...], b1_ref[...])

    inter = jnp.dot(attn.astype(bf16), iw_ref[...], preferred_element_type=f32) + ib_ref[...]
    # erf-GELU (matches the torch.erf reference); fp32 elementwise, exp on the EUP.
    inter = inter * 0.5 * (1.0 + _erf_approx(inter * (1.0 / math.sqrt(2.0))))

    out = jnp.dot(inter.astype(bf16), ow_ref[...], preferred_element_type=f32) + ob_ref[...]
    out = _layernorm(out + attn, g2_ref[...], b2_ref[...])
    o_ref[0] = out.astype(o_ref.dtype)


def pooler_cls_kernel(x_ref, pw_ref, pb_ref, cw_ref, cb_ref, o_ref):
    pooled = jnp.tanh(
        jnp.dot(x_ref[...].astype(jnp.bfloat16), pw_ref[...],
                preferred_element_type=jnp.float32) + pb_ref[...])
    o_ref[...] = (jnp.dot(pooled.astype(jnp.bfloat16), cw_ref[...],
                          preferred_element_type=jnp.float32) + cb_ref[...])


# -------------------------------- wrappers -----------------------------------

def layernorm_pallas(x, gamma, beta):
    B, S, H = x.shape
    return pl.pallas_call(
        ln_kernel,
        out_shape=jax.ShapeDtypeStruct((B, S, H), jnp.float32),
        grid=(B,),
        in_specs=[pl.BlockSpec((1, S, H), lambda b: (b, 0, 0)),
                  pl.BlockSpec((1, H), lambda b: (0, 0)),
                  pl.BlockSpec((1, H), lambda b: (0, 0))],
        out_specs=pl.BlockSpec((1, S, H), lambda b: (b, 0, 0)),
        compiler_params=pltpu.CompilerParams(dimension_semantics=("parallel",)),
    )(x, gamma, beta)


def bert_layer_pallas(hidden, mask_add, lp, num_heads):
    B, S, H = hidden.shape
    head_dim = H // num_heads
    # Query-row tile: 128 rows per step at real BERT shapes, full S for tiny sequences.
    TQ = 128 if S % 128 == 0 else S
    n_q = S // TQ

    weights = [lp["q_w"], lp["q_b"], lp["k_w"], lp["k_b"], lp["v_w"], lp["v_b"],
               lp["ao_w"], lp["ao_b"], lp["ln1_g"], lp["ln1_b"],
               lp["i_w"], lp["i_b"], lp["o_w"], lp["o_b"], lp["ln2_g"], lp["ln2_b"]]
    # Constant index_map -> each (bf16) weight is DMA'd into VMEM once and stays resident
    # across all grid steps; the pipeline only re-fetches when the block index changes.
    weight_specs = [pl.BlockSpec(w.shape, lambda b, q: (0, 0)) for w in weights]

    return pl.pallas_call(
        functools.partial(bert_layer_kernel, num_heads=num_heads, head_dim=head_dim),
        out_shape=jax.ShapeDtypeStruct((B, S, H), jnp.float32),
        grid=(B, n_q),
        in_specs=[pl.BlockSpec((1, TQ, H), lambda b, q: (b, q, 0)),   # query rows
                  pl.BlockSpec((1, S, H), lambda b, q: (b, 0, 0)),    # full seq (K/V source)
                  pl.BlockSpec((1, 1, S), lambda b, q: (b, 0, 0))] + weight_specs,
        out_specs=pl.BlockSpec((1, TQ, H), lambda b, q: (b, q, 0)),
        scratch_shapes=[pltpu.VMEM((num_heads, S, head_dim), jnp.bfloat16),   # K resident
                        pltpu.VMEM((num_heads, S, head_dim), jnp.bfloat16)],  # V resident
        compiler_params=pltpu.CompilerParams(
            # q axis carries the K/V scratch -> "arbitrary"; batch axis is independent.
            dimension_semantics=("parallel", "arbitrary"),
            vmem_limit_bytes=64 * 1024 * 1024),
    )(hidden, hidden, mask_add, *weights)


def pooler_classifier_pallas(first_token, pooler_w, pooler_b, cls_w, cls_b):
    B, H = first_token.shape
    L = cls_w.shape[1]
    # Pad the classifier output to a full 128-lane tile so the store is lane-dense
    # (unmasked vst); logits are sliced back to L outside the kernel.
    L_pad = max(128, ((L + 127) // 128) * 128)
    cw = jnp.zeros((H, L_pad), cls_w.dtype).at[:, :L].set(cls_w)
    cb = jnp.zeros((1, L_pad), cls_b.dtype).at[:, :L].set(cls_b)
    out = pl.pallas_call(
        pooler_cls_kernel,
        out_shape=jax.ShapeDtypeStruct((B, L_pad), jnp.float32),
        grid=(1,),
        in_specs=[pl.BlockSpec((B, H), lambda i: (0, 0)),
                  pl.BlockSpec((H, H), lambda i: (0, 0)),
                  pl.BlockSpec((1, H), lambda i: (0, 0)),
                  pl.BlockSpec((H, L_pad), lambda i: (0, 0)),
                  pl.BlockSpec((1, L_pad), lambda i: (0, 0))],
        out_specs=pl.BlockSpec((B, L_pad), lambda i: (0, 0)),
    )(first_token, pooler_w, pooler_b, cw, cb)
    return out[:, :L]


def bert_for_sequence_classification(params, input_ids, token_type_ids, attention_mask,
                                     num_heads):
    B, S = input_ids.shape
    pos_ids = jnp.arange(S, dtype=jnp.int32)[None, :]
    # embedding gathers (glue) then LayerNorm in Pallas
    emb = (params["word_emb"][input_ids]
           + params["pos_emb"][pos_ids]
           + params["type_emb"][token_type_ids])
    hidden = layernorm_pallas(emb, params["emb_ln_g"], params["emb_ln_b"])

    # extended attention mask: (1 - mask) * -10000, broadcast over heads & query rows
    mask_add = ((1.0 - attention_mask.astype(jnp.float32)) * -10000.0)[:, None, :]  # (B,1,S)

    for lp in params["layers"]:
        hidden = bert_layer_pallas(hidden, mask_add, lp, num_heads)

    logits = pooler_classifier_pallas(hidden[:, 0, :],
                                      params["pooler_w"], params["pooler_b"],
                                      params["cls_w"], params["cls_b"])
    return logits


# ------------------------- deterministic param init --------------------------

def init_params(key, cfg, num_labels):
    std = cfg["initializer_range"]
    H, I = cfg["hidden_size"], cfg["intermediate_size"]
    keys = iter(jax.random.split(key, 256))
    nk = lambda: next(keys)
    normal = lambda shape: std * jax.random.normal(nk(), shape, dtype=jnp.float32)
    # Matmul weights live in bf16 (HBM/VMEM traffic + native MXU path); biases / LN fp32.
    wmat = lambda shape: normal(shape).astype(jnp.bfloat16)

    params = {
        "word_emb": normal((cfg["vocab_size"], H)),
        "pos_emb": normal((cfg["max_position_embeddings"], H)),
        "type_emb": normal((cfg["type_vocab_size"], H)),
        "emb_ln_g": normal((1, H)),
        "emb_ln_b": normal((1, H)),
        "pooler_w": wmat((H, H)),
        "pooler_b": jnp.zeros((1, H), jnp.float32),
        "cls_w": wmat((H, num_labels)),
        "cls_b": jnp.zeros((1, num_labels), jnp.float32),
        "layers": [],
    }
    for _ in range(cfg["num_hidden_layers"]):
        params["layers"].append({
            "q_w": wmat((H, H)), "q_b": jnp.zeros((1, H), jnp.float32),
            "k_w": wmat((H, H)), "k_b": jnp.zeros((1, H), jnp.float32),
            "v_w": wmat((H, H)), "v_b": jnp.zeros((1, H), jnp.float32),
            "ao_w": wmat((H, H)), "ao_b": jnp.zeros((1, H), jnp.float32),
            "ln1_g": normal((1, H)), "ln1_b": normal((1, H)),
            "i_w": wmat((H, I)), "i_b": jnp.zeros((1, I), jnp.float32),
            "o_w": wmat((I, H)), "o_b": jnp.zeros((1, H), jnp.float32),
            "ln2_g": normal((1, H)), "ln2_b": normal((1, H)),
        })
    return params


# --------------------------- pure-JAX reference -------------------------------

def ref_forward(params, input_ids, token_type_ids, attention_mask, num_heads):
    # fp32 reference using the same (bf16-valued) weights promoted to fp32.
    H = params["word_emb"].shape[1]
    hd = H // num_heads
    B, S = input_ids.shape
    f = lambda w: w.astype(jnp.float32)

    def ln(x, g, b):
        u = x.mean(-1, keepdims=True)
        s = ((x - u) ** 2).mean(-1, keepdims=True)
        return g * ((x - u) / jnp.sqrt(s + LN_EPS)) + b

    emb = (params["word_emb"][input_ids]
           + params["pos_emb"][jnp.arange(S)][None]
           + params["type_emb"][token_type_ids])
    x = ln(emb, params["emb_ln_g"], params["emb_ln_b"])
    mask = ((1.0 - attention_mask.astype(jnp.float32)) * -10000.0)[:, None, None, :]

    for lp in params["layers"]:
        def split(t):
            return t.reshape(B, S, num_heads, hd).transpose(0, 2, 1, 3)
        q = split(x @ f(lp["q_w"]) + lp["q_b"])
        k = split(x @ f(lp["k_w"]) + lp["k_b"])
        v = split(x @ f(lp["v_w"]) + lp["v_b"])
        sc = jnp.einsum("bhqd,bhkd->bhqk", q, k) / math.sqrt(hd) + mask
        p = jax.nn.softmax(sc, axis=-1)
        ctx = jnp.einsum("bhqk,bhkd->bhqd", p, v).transpose(0, 2, 1, 3).reshape(B, S, H)
        attn = ln(ctx @ f(lp["ao_w"]) + lp["ao_b"] + x, lp["ln1_g"], lp["ln1_b"])
        inter = attn @ f(lp["i_w"]) + lp["i_b"]
        inter = inter * 0.5 * (1.0 + jsp_erf(inter / math.sqrt(2.0)))
        x = ln(inter @ f(lp["o_w"]) + lp["o_b"] + attn, lp["ln2_g"], lp["ln2_b"])

    pooled = jnp.tanh(x[:, 0] @ f(params["pooler_w"]) + params["pooler_b"])
    return pooled @ f(params["cls_w"]) + params["cls_b"]


# ----------------------------------- main -------------------------------------

if __name__ == "__main__":
    cfg = dict(vocab_size=128, hidden_size=64, num_hidden_layers=2,
               num_attention_heads=4, intermediate_size=128,
               max_position_embeddings=32, type_vocab_size=2,
               initializer_range=0.02)
    num_labels = 2
    B, S = 2, 8

    key = jax.random.PRNGKey(0)
    pk, ik, tk = jax.random.split(key, 3)
    params = init_params(pk, cfg, num_labels)

    input_ids = jax.random.randint(ik, (B, S), 0, cfg["vocab_size"], dtype=jnp.int32)
    token_type_ids = jax.random.randint(tk, (B, S), 0, cfg["type_vocab_size"], dtype=jnp.int32)
    attention_mask = jnp.array([[1, 1, 1, 1, 1, 1, 1, 1],
                                [1, 1, 1, 1, 1, 0, 0, 0]], dtype=jnp.int32)

    logits = bert_for_sequence_classification(params, input_ids, token_type_ids,
                                              attention_mask, cfg["num_attention_heads"])
    logits = jax.block_until_ready(logits)
    assert logits.shape == (B, num_labels)

    ref = ref_forward(params, input_ids, token_type_ids, attention_mask,
                      cfg["num_attention_heads"])
    np.testing.assert_allclose(np.asarray(logits), np.asarray(ref), atol=1e-3, rtol=1e-2)

    print("KERNEL_OK")
</pallas_src>

<mosaic_0001>
module attributes {stable_mosaic.version = 11 : i64} {
  func.func @ln_kernel(%arg0: i32, %arg1: memref<1x8x64xf32, #tpu.memory_space<vmem>>, %arg2: memref<1x64xf32, #tpu.memory_space<vmem>>, %arg3: memref<1x64xf32, #tpu.memory_space<vmem>>, %arg4: memref<1x8x64xf32, #tpu.memory_space<vmem>>) attributes {dimension_semantics = [#tpu.dimension_semantics<parallel>], iteration_bounds = array<i64: 2>, scalar_prefetch = 0 : i64, scratch_operands = 0 : i64, tpu.core_type = #tpu.core_type<tc>, window_params = [{transform_indices = @transform_0, window_bounds = array<i64: 1, 8, 64>}, {pipeline_mode = #tpu.pipeline_mode<synchronous>, transform_indices = @transform_1, window_bounds = array<i64: 1, 64>}, {pipeline_mode = #tpu.pipeline_mode<synchronous>, transform_indices = @transform_2, window_bounds = array<i64: 1, 64>}, {transform_indices = @transform_3, window_bounds = array<i64: 1, 8, 64>}]} {
    %c0 = arith.constant 0 : index
    %c0_0 = arith.constant 0 : index
    %c0_1 = arith.constant 0 : index
    %0 = vector.load %arg1[%c0, %c0_0, %c0_1] : memref<1x8x64xf32, #tpu.memory_space<vmem>>, vector<1x8x64xf32>
    %1 = vector.shape_cast %0 : vector<1x8x64xf32> to vector<8x64xf32>
    %c0_2 = arith.constant 0 : index
    %c0_3 = arith.constant 0 : index
    %2 = vector.load %arg2[%c0_2, %c0_3] : memref<1x64xf32, #tpu.memory_space<vmem>>, vector<1x64xf32>
    %c0_4 = arith.constant 0 : index
    %c0_5 = arith.constant 0 : index
    %3 = vector.load %arg3[%c0_4, %c0_5] : memref<1x64xf32, #tpu.memory_space<vmem>>, vector<1x64xf32>
    %cst = arith.constant dense<0.000000e+00> : vector<8xf32>
    %4 = vector.multi_reduction <add>, %1, %cst [1] : vector<8x64xf32> to vector<8xf32>
    %5 = vector.shape_cast %4 : vector<8xf32> to vector<8x1xf32>
    %cst_6 = arith.constant 6.400000e+01 : f32
    %6 = vector.broadcast %cst_6 : f32 to vector<8x1xf32>
    %7 = arith.divf %5, %6 : vector<8x1xf32>
    %8 = vector.broadcast %7 : vector<8x1xf32> to vector<8x64xf32>
    %9 = arith.subf %1, %8 : vector<8x64xf32>
    %10 = arith.mulf %9, %9 : vector<8x64xf32>
    %cst_7 = arith.constant dense<0.000000e+00> : vector<8xf32>
    %11 = vector.multi_reduction <add>, %10, %cst_7 [1] : vector<8x64xf32> to vector<8xf32>
    %12 = vector.shape_cast %11 : vector<8xf32> to vector<8x1xf32>
    %cst_8 = arith.constant 6.400000e+01 : f32
    %13 = vector.broadcast %cst_8 : f32 to vector<8x1xf32>
    %14 = arith.divf %12, %13 : vector<8x1xf32>
    %15 = vector.broadcast %7 : vector<8x1xf32> to vector<8x64xf32>
    %16 = arith.subf %1, %15 : vector<8x64xf32>
    %cst_9 = arith.constant 9.99999996E-13 : f32
    %17 = vector.broadcast %cst_9 : f32 to vector<8x1xf32>
    %18 = arith.addf %14, %17 : vector<8x1xf32>
    %19 = math.rsqrt %18 : vector<8x1xf32>
    %20 = vector.broadcast %19 : vector<8x1xf32> to vector<8x64xf32>
    %21 = arith.mulf %16, %20 : vector<8x64xf32>
    %22 = vector.broadcast %2 : vector<1x64xf32> to vector<8x64xf32>
    %23 = arith.mulf %22, %21 : vector<8x64xf32>
    %24 = vector.broadcast %3 : vector<1x64xf32> to vector<8x64xf32>
    %25 = arith.addf %23, %24 : vector<8x64xf32>
    %c0_10 = arith.constant 0 : index
    %c0_11 = arith.constant 0 : index
    %c0_12 = arith.constant 0 : index
    %26 = vector.load %arg4[%c0_10, %c0_11, %c0_12] : memref<1x8x64xf32, #tpu.memory_space<vmem>>, vector<1x8x64xf32>
    %27 = vector.shape_cast %26 : vector<1x8x64xf32> to vector<8x64xf32>
    %28 = vector.shape_cast %25 : vector<8x64xf32> to vector<1x8x64xf32>
    tpu.vector_store %arg4[%c0_10, %c0_11, %c0_12], %28 {strides = array<i32>} : memref<1x8x64xf32, #tpu.memory_space<vmem>>, vector<1x8x64xf32>,
    return
  }
  func.func @transform_0(%arg0: i32) -> (i32, i32, i32) {
    %c0_i32 = arith.constant 0 : i32
    %c0_i32_0 = arith.constant 0 : i32
    %c0_i32_1 = arith.constant 0 : i32
    return %arg0, %c0_i32, %c0_i32_0 : i32, i32, i32
  }
  func.func @transform_1(%arg0: i32) -> (i32, i32) {
    %c0_i32 = arith.constant 0 : i32
    %c0_i32_0 = arith.constant 0 : i32
    %c0_i32_1 = arith.constant 0 : i32
    return %c0_i32, %c0_i32_0 : i32, i32
  }
  func.func @transform_2(%arg0: i32) -> (i32, i32) {
    %c0_i32 = arith.constant 0 : i32
    %c0_i32_0 = arith.constant 0 : i32
    %c0_i32_1 = arith.constant 0 : i32
    return %c0_i32, %c0_i32_0 : i32, i32
  }
  func.func @transform_3(%arg0: i32) -> (i32, i32, i32) {
    %c0_i32 = arith.constant 0 : i32
    %c0_i32_0 = arith.constant 0 : i32
    %c0_i32_1 = arith.constant 0 : i32
    return %arg0, %c0_i32, %c0_i32_0 : i32, i32, i32
  }
}

</mosaic_0001>

<bundles_post_ra>
// kernel: tpu_custom_call.1
= control target key start
LH: loop header
LB: loop body
LE: loop exit
PB: predicated region body
PF: predicated region fallthrough
CT: control target
= control target key end

     0   :  { %8 = vsyncpa [#allocation3], 0  ;;  %s655_s0 = inlined_call_operand.hbm [shape: f32[2,8,64], index: 0, kind: input, shape index: {}]   ;;  %s656_s1 = inlined_call_operand.vmem [shape: f32[1,64], index: 1, kind: input, shape index: {}]   ;;  %s657_s2 = inlined_call_operand.vmem [shape: f32[1,64], index: 2, kind: input, shape index: {}]   ;;  %s658_s3 = inlined_call_operand.hbm [shape: f32[2,8,64], index: 3, kind: output, shape index: {}]  }
   0x1   :  { %10 = vsyncpa [#allocation3 + $0x1], 0 }
   0x2   :  { %11 = vsyncpa [#allocation4], 0 }
   0x3   :  { %13 = vsyncpa [#allocation4 + $0x1], 0  ;;  %s485_s12 = smov 0   ;;  %s487_s13 = smov 0  }
   0x4   :  { %s489_s14 = smov 0   ;;  %s491_s15 = smov 0  }
   0x5 LB: > { %s506_s16 = sadd.s32 4294967295, %s461_s15   ;;  %s303_s17 = sadd.s32 4294967294, %s461_s15   ;;  %s461_s15 = sphi %s491_s15, %s673_s15   ;;  %s457_s14 = sphi %s489_s14, %s672_s14   ;;  %s453_s13 = sphi %s487_s13, %s671_s13   ;;  %s449_s12 = sphi %s485_s12, %s670_s12  }
   0x6   : > { %s510_s18 = sadd.s32 1, %s461_s15   ;;  %s26_s19 = sadd.s32 1, %s457_s14 }
   0x7   : > { %s23_s20 = ssub.s32 %s461_s15, %s510_s18  ;;  %p33_p0 = scmp.ne.s32.totalorder %s457_s14, %s453_s13 }
   0x8   : > { %p24_p1 = scmp.eq.s32.totalorder %s23_s20, 0  ;;  %p34_p2 = scmp.eq.s32.totalorder %s461_s15, 0 }
   0x9   : > { %p39_p3 = scmp.ne.s32.totalorder %s453_s13, %s449_s12  ;;  %p40_p4 = scmp.eq.s32.totalorder %s506_s16, 0 }
   0xa   : > { %s522_s21 = scalar_select %p24_p1, %s457_s14, %s26_s19  }
   0xb   : > { %p524_p5 = por %p34_p2, %p33_p0  ;;  %p528_p6 = por %p40_p4, %p39_p3 }
   0xc   : > { %p105_p7 = scmp.eq.s32.totalorder %s506_s16, 1  ;;  %p111_p8 = scmp.eq.s32.totalorder %s303_s17, 1 }
   0xd   : > { %p329_p10 = scmp.lt.s32.totalorder %s461_s15, 2  ;;  %s137_s26 = sand.u32 1, %s457_s14  }
   0xe   : > { %p535_p11 = por %p105_p7, %p33_p0  ;;  %p539_p12 = por %p111_p8, %p39_p3 }
   0xf   : > { %s307_s27 = sshll.u32 %s461_s15, 7  ;;  %s306_s28 = sshll.u32 %s137_s26, 3 }
  0x10   : > { %s662_s24 = scalar_select %p535_p11, 1, 0 }
  0x11   : > { %s663_s25 = scalar_select %p539_p12, 1, 0 }
  0x12   : > { %s548_s4 = scalar_lea.hbm %s655_s0, %s307_s27  ;;  %s141_s5 = scalar_lea.vmem [#allocation2], %s306_s28 }
  0x13   : > { %s148_s6 = sshll.u32 %s141_s5, 4  ;;  %p552_p13 = pnand %p329_p10, %p524_p5  ;;  %s556_s6 = int_to_ptr.vmem [resolvable:$true] %s148_s6 }
  0x14   : > { %s138_s8 = scalar_lea.sflag [#allocation3], %s137_s26  ;;  %s365_s9 = scalar_lea.hbm %s548_s4, 128 }
  0x15   : > { %p366_p2 = scmp.ne.s32.totalorder %s548_s4, %s365_s9  ;;  %p367_p3 = pneg %p552_p13 }
  0x16   : > { %s370_s17 = scalar_lea.hbm %s655_s0, 256  ;;  %p371_p5 = scmp.lt.u32.totalorder %s548_s4, %s655_s0 }
  0x17   : > { %p368_p4 = pnand %p367_p3, %p366_p2  ;;  %p372_p8 = scmp.lt.u32.totalorder %s370_s17, %s365_s9 }
  0x18   : > { %p374_p9 = scmp.lt.u32.totalorder %s365_s9, %s548_s4 }
  0x19   : > { %p369_p7 = pneg %p368_p4  ;;  %p373_p10 = por %p372_p8, %p371_p5 }
  0x1b   : > { %p375_p0 = por %p374_p9, %p373_p10 }
  0x1d   : > { %p376_p1 = pnand %p375_p0, %p369_p7 }
  0x1f   : > { %379 = shalt.err (!%p376_p1)
}
  0x20   : > { %s380_s22 = scalar_lea.vmem %s556_s6, 128  ;;  %s463_s26 = smov [#allocation2]  }
  0x21   : > { %p381_p2 = scmp.ne.s32.totalorder %s556_s6, %s380_s22  ;;  %s385_s27 = sshll.u32 %s463_s26, 4  ;;  %s386_s27 = int_to_ptr.vmem [resolvable:$false] %s385_s27 }
  0x22   : > { %s387_s28 = scalar_lea.vmem %s386_s27, 256  ;;  %p388_p11 = scmp.lt.s32.totalorder %s556_s6, %s386_s27 }
  0x23   : > { %p383_p4 = pnand %p381_p2, %p367_p3  ;;  %p389_p5 = scmp.lt.s32.totalorder %s387_s28, %s380_s22 }
  0x25   : > { %p384_p12 = pneg %p383_p4  ;;  %p390_p8 = por %p389_p5, %p388_p11 }
  0x27   : > { %p391_p9 = pnand %p390_p8, %p384_p12 }
  0x29   : > { %394 = shalt.err (!%p391_p9)
}
  0x2a   : > { %324 = dma.hbm_to_vmem [thread:$0]  (!%p552_p13), %s548_s4, 128, %s556_s6, %s138_s8  }
  0x2b   : > { %p665_p0 = scmp.lt.s32.totalorder %s461_s15, 3  ;;  %p666_p1 = scmp.ge.s32.totalorder %s461_s15, 1 }
  0x2d   : > { %p154_p3 = pnand %p666_p1, %p665_p0 }
  0x2e   : > { %s590_s29 = sand.u32 (!%p154_p3), 1, %s453_s13  }
  0x2f   : > { %157 = sbr.rel (%p154_p3) target bundleno = 383 (0x17f), region = 32  ;;  %s309_s30 = sshll.u32 (!%p154_p3), %s590_s29, 3 }
  0x30   : > { %s160_s5 = scalar_lea.sflag (!%p154_p3), [#allocation3], %s590_s29  ;;  %s163_s9 = scalar_lea.vmem (!%p154_p3), [#allocation2], %s309_s30 }
  0x36   : > { %440 = dma.done.wait (%p528_p6), %s160_s5, 128  }
  0x37   : > { %442 = vsyncadd (%p528_p6), %s160_s5, 4294967168  ;;  %vm189_vm0 = vcmask 523264   ;;  %v186_v0 = vld [vmem:[%s163_s9] sm:$0xff]  ;;  %s314_s8 = sshll.u32 %s506_s16, 7  ;;  %s185_s10 = scalar_lea.vmem [#allocation5], %s309_s30 }
  0x38   : > { %v190_v1 = vsel %vm189_vm0, %v186_v0, 0.0  ;;  %v311_v11 = vld [vmem:[%s656_s1] ss:$0 sm:$0xff]  ;;  %s233_s11 = sshll.u32 %s185_s10, 4  ;;  %s610_s20 = scalar_lea.hbm %s658_s3, %s314_s8  ;;  %s612_s11 = int_to_ptr.vmem [resolvable:$true] %s233_s11 }
  0x39   : > { %191 = vadd.xlane.f32.xlu0 %v190_v1  ;;  %v312_v13 = vld [vmem:[%s657_s2] ss:$0 sm:$0xff]  ;;  %s220_s22 = scalar_lea.sflag [#allocation4], %s590_s29  ;;  %s395_s26 = scalar_lea.vmem %s612_s11, 128 }
  0x3a   : > { %p396_p6 = scmp.ne.s32.totalorder %s612_s11, %s395_s26  ;;  %p667_p11 = scmp.ne.s32.totalorder %s662_s24, 0 }
  0x3b   : > { %s464_s16 = smov [#allocation5]  }
  0x3c   : > { %p397_p12 = pnand %p396_p6, %p667_p11  ;;  %s399_s27 = sshll.u32 %s464_s16, 4  ;;  %s400_s27 = int_to_ptr.vmem [resolvable:$false] %s399_s27 }
  0x3d   : > { %s401_s28 = scalar_lea.vmem %s400_s27, 256  ;;  %p402_p7 = scmp.lt.s32.totalorder %s612_s11, %s400_s27 }
  0x3e   : > { %p398_p13 = pneg %p397_p12  ;;  %p403_p10 = scmp.lt.s32.totalorder %s401_s28, %s395_s26 }
  0x40   : > { %p404_p2 = por %p403_p10, %p402_p7 }
  0x42   : > { %p405_p4 = pnand %p404_p2, %p398_p13 }
  0xc6   : > { %v192_v2 = vpop.xlane.xlu0 %191 }
  0xc7   : > { %v194_v3 = vmul.f32 0.015625, %v192_v2 }
  0xc9   : > { %v195_v4 = vsub.f32 %v186_v0, %v194_v3 }
  0xcb   : > { %v196_v5 = vmul.f32 %v195_v4, %v195_v4 }
  0xcd   : > { %v197_v6 = vsel %vm189_vm0, %v196_v5, 0.0 }
  0xce   : > { %198 = vadd.xlane.f32.xlu0 %v197_v6 }
 0x15b   : > { %v199_v7 = vpop.xlane.xlu0 %198 }
 0x15c   : > { %v200_v8 = vmul.f32 0.015625, %v199_v7 }
 0x15e   : > { %v201_v9 = vadd.f32 1e-12, %v200_v8 }
 0x160   : > { %363 = vrsqrt.f32 %v201_v9 }
 0x16a   : > { %v364_v10 = vpop.eup %363 }
 0x16b   : > { %v203_v12 = vmul.f32 %v364_v10, %v195_v4 }
 0x16d   : > { %v210_v14 = vmul.f32 %v311_v11, %v203_v12 }
 0x16f   : > { %v217_v15 = vadd.f32 %v312_v13, %v210_v14 }
 0x171   : > { %218 = vst.msk [vmem:[%s185_s10] sm:$0xff] %vm189_vm0, %v217_v15 }
 0x172   : > { %408 = shalt.err (!%p405_p4)
}
 0x173   : > { %s409_s29 = scalar_lea.hbm %s610_s20, 128  ;;  %s413_s9 = scalar_lea.hbm %s658_s3, 256 }
 0x174   : > { %p410_p5 = scmp.ne.s32.totalorder %s610_s20, %s409_s29  ;;  %p414_p0 = scmp.lt.u32.totalorder %s610_s20, %s658_s3 }
 0x175   : > { %p415_p1 = scmp.lt.u32.totalorder %s413_s9, %s409_s29  ;;  %p417_p6 = scmp.lt.u32.totalorder %s409_s29, %s610_s20 }
 0x176   : > { %p411_p8 = pnand %p410_p5, %p667_p11 }
 0x177   : > { %p416_p3 = por %p415_p1, %p414_p0 }
 0x178   : > { %p412_p9 = pneg %p411_p8 }
 0x179   : > { %p418_p12 = por %p417_p6, %p416_p3 }
 0x17b   : > { %p419_p13 = pnand %p418_p12, %p412_p9 }
 0x17d   : > { %422 = shalt.err (!%p419_p13)
}
 0x17e   : > { %319 = dma.vmem_to_hbm [thread:$0]  (%p667_p11), %s612_s11, 128, %s610_s20, %s220_s22  }
 0x17f PF: > { %s245_s6 = sand.u32 1, %s449_s12   ;;  %p668_p7 = scmp.ne.s32.totalorder %s663_s25, 0 }
 0x180   : > { %p669_p10 = scmp.ge.s32.totalorder %s461_s15, 2  ;;  %s246_s7 = scalar_lea.sflag [#allocation4], %s245_s6 }
 0x182   : > { %p326_p2 = pnand %p669_p10, %p668_p7 }
 0x184   : > { %444 = dma.done.wait (!%p326_p2), %s246_s7, 128  }
 0x185   : > { %446 = vsyncadd (!%p326_p2), %s246_s7, 4294967168  ;;  %p16_p4 = scmp.ge.s32.totalorder %s510_s18, 4   ;;  %s670_s12 = smov %s453_s13 }
 0x186   : > { %s671_s13 = smov %s457_s14  ;;  %s672_s14 = smov %s522_s21 }
 0x187   : > { %s673_s15 = smov %s510_s18  ;;  %18 = sbr.rel (!%p16_p4) target bundleno = 5 (0x5), region = 77 }
 0x18e   :  { %251 = vsyncpa [#allocation3], 1 }
 0x18f   :  { %253 = vsyncpa [#allocation3 + $0x1], 1 }
 0x190   :  { %254 = vsyncpa [#allocation4], 1 }
 0x191   :  { %256 = vsyncpa [#allocation4 + $0x1], 1 }

</bundles_post_ra>
